<compile_context>
chip_gen: v7x
topology: tpu7x:2x2x1
jax: 0.10.0
libtpu: 0.0.40
codegen_flags: <defaults>
</compile_context>

<pallas_src>
import functools

import jax
import jax.numpy as jnp
import numpy as np
from jax.experimental import pallas as pl

MAX_LEN = 80          # max_length=80 in the torch module
LANE = 128            # lane-dense kernel width (seq padded 80 -> 128 on-device)
VOCAB = 32000         # Llama vocab size
UNK_ID = 0            # '<unk>'
BOS_ID = 1            # '<s>'
EOS_ID = 2            # '</s>'  (add_eos_token=True)
PAD_ID = 29871        # id used for pad_token ' ' (deterministic synthetic choice)


def _tokenizer_kernel(raw_ref, ids_ref, *, n_text):
    """Assemble padded/truncated input_ids for one string.

    raw_ref: VMEM (1, LANE) int32 -- raw text token ids placed at positions
             [1, 1+n_text) (position 0 reserved for BOS)
    ids_ref: VMEM (1, LANE) int32 out -- encoding.input_ids (lane-padded)
    n_text:  static Python int -- number of valid text tokens (already
             truncated to MAX_LEN - 2 on the host)
    """
    pos = jax.lax.broadcasted_iota(jnp.int32, (1, LANE), 1)

    ids = raw_ref[...]
    ids = jnp.where(pos == 0, BOS_ID, ids)            # leading BOS
    ids = jnp.where(pos == n_text + 1, EOS_ID, ids)   # add_eos_token=True
    ids = jnp.where(pos > n_text + 1, PAD_ID, ids)    # padding='max_length'
    ids_ref[...] = ids


def tokenize_ids(raw_padded, n_valid):
    """raw_padded: (1, LANE) int32 with text tokens at [1, 1+n_valid).

    Returns the lane-padded (1, LANE) id tensor; caller slices to MAX_LEN.
    """
    kernel = functools.partial(_tokenizer_kernel, n_text=int(n_valid))
    return pl.pallas_call(
        kernel,
        out_shape=jax.ShapeDtypeStruct((1, LANE), jnp.int32),
        in_specs=[pl.BlockSpec((1, LANE), lambda: (0, 0))],
        out_specs=pl.BlockSpec((1, LANE), lambda: (0, 0)),
        input_output_aliases={0: 0},
    )(raw_padded)


# ---------------------------------------------------------------------------
# Plain-Python glue that stands in for the LlamaTokenizer string machinery.
# ---------------------------------------------------------------------------

# TODO(synk): real SentencePiece/BPE string->id encoding has no Pallas
# equivalent; a deterministic synthetic word->id map is used instead.
def _word_to_id(word: str) -> int:
    h = 0
    for c in word:
        h = (h * 131 + ord(c)) % (VOCAB - 3)
    return h + 3  # avoid special ids 0 (<unk>), 1 (<s>), 2 (</s>)


def _id_to_token(i: int) -> str:
    if i == UNK_ID:
        return "<unk>"
    if i == BOS_ID:
        return "<s>"
    if i == EOS_ID:
        return "</s>"
    if i == PAD_ID:
        return " "
    return f"tok_{i}"


def tokenizer_forward(text: str):
    """Mirrors Tokenizer.forward: returns (input_ids [1,80], token_lst)."""
    full = "summarize: " + text
    words = full.split()

    # Deterministic synthetic "tokenization": one id per whitespace word,
    # perturbed with PRNGKey(0)-derived ids so the example input is seeded.
    key = jax.random.PRNGKey(0)
    rand_ids = jax.random.randint(key, (len(words),), 3, VOCAB, dtype=jnp.int32)
    raw = jnp.asarray([_word_to_id(w) for w in words], dtype=jnp.int32)
    raw = jnp.where(jnp.arange(len(words)) % 5 == 4, UNK_ID, raw)  # some <unk>
    raw = jnp.where(jnp.arange(len(words)) % 7 == 6, rand_ids, raw)

    # truncation: at most MAX_LEN - 2 text tokens (room for BOS + EOS)
    n_valid = min(len(words), MAX_LEN - 2)
    raw_arr = jnp.zeros((1, LANE), dtype=jnp.int32)
    raw_arr = raw_arr.at[0, 1 : 1 + n_valid].set(raw[:n_valid])

    ids_padded = tokenize_ids(raw_arr, n_valid)       # (1, 128)
    input_ids = ids_padded[:, :MAX_LEN]               # logical (1, 80)

    # TODO(synk): id->token-string decoding cannot run on-device; reconstruct
    # the filtered token list host-side (keep mask = id != '<unk>').
    ids_np = np.asarray(input_ids)[0]
    token_lst = [_id_to_token(int(i)) for i in ids_np if int(i) != UNK_ID]
    return input_ids, token_lst


if __name__ == "__main__":
    text = ("a person walks into the room and sits down at the table while "
            "another person reads a book near the window before leaving")
    input_ids, token_lst = tokenizer_forward(text)
    jax.block_until_ready(input_ids)

    # sanity checks on the kernel output
    ids_np = np.asarray(input_ids)
    assert ids_np.shape == (1, MAX_LEN) and ids_np.dtype == np.int32
    assert ids_np[0, 0] == BOS_ID
    assert EOS_ID in ids_np[0]
    assert (ids_np[0, np.argmax(ids_np[0] == EOS_ID) + 1 :] == PAD_ID).all()
    assert "<unk>" not in token_lst

    print("KERNEL_OK")
</pallas_src>

<mosaic_0001>
module attributes {stable_mosaic.version = 11 : i64} {
  func.func @_tokenizer_kernel(%arg0: memref<1x128xi32, #tpu.memory_space<vmem>>, %arg1: memref<1x128xi32, #tpu.memory_space<vmem>>) attributes {dimension_semantics = [], scalar_prefetch = 0 : i64, scratch_operands = 0 : i64, tpu.core_type = #tpu.core_type<tc>} {
    %0 = tpu.iota {dimensions = array<i32: 1>} : vector<1x128xi32>
    %c0 = arith.constant 0 : index
    %c0_0 = arith.constant 0 : index
    %1 = vector.load %arg0[%c0, %c0_0] : memref<1x128xi32, #tpu.memory_space<vmem>>, vector<1x128xi32>
    %c0_i32 = arith.constant 0 : i32
    %2 = vector.broadcast %c0_i32 : i32 to vector<1x128xi32>
    %3 = arith.cmpi eq, %0, %2 : vector<1x128xi32>
    %c1_i32 = arith.constant 1 : i32
    %4 = vector.broadcast %c1_i32 : i32 to vector<1x128xi32>
    %5 = arith.select %3, %4, %1 : vector<1x128xi1>, vector<1x128xi32>
    %c25_i32 = arith.constant 25 : i32
    %6 = vector.broadcast %c25_i32 : i32 to vector<1x128xi32>
    %7 = arith.cmpi eq, %0, %6 : vector<1x128xi32>
    %c2_i32 = arith.constant 2 : i32
    %8 = vector.broadcast %c2_i32 : i32 to vector<1x128xi32>
    %9 = arith.select %7, %8, %5 : vector<1x128xi1>, vector<1x128xi32>
    %c25_i32_1 = arith.constant 25 : i32
    %10 = vector.broadcast %c25_i32_1 : i32 to vector<1x128xi32>
    %11 = arith.cmpi sgt, %0, %10 : vector<1x128xi32>
    %c29871_i32 = arith.constant 29871 : i32
    %12 = vector.broadcast %c29871_i32 : i32 to vector<1x128xi32>
    %13 = arith.select %11, %12, %9 : vector<1x128xi1>, vector<1x128xi32>
    %c0_2 = arith.constant 0 : index
    %c0_3 = arith.constant 0 : index
    %14 = vector.load %arg1[%c0_2, %c0_3] : memref<1x128xi32, #tpu.memory_space<vmem>>, vector<1x128xi32>
    tpu.vector_store %arg1[%c0_2, %c0_3], %13 {strides = array<i32>} : memref<1x128xi32, #tpu.memory_space<vmem>>, vector<1x128xi32>,
    return
  }
}

</mosaic_0001>

<bundles_post_ra>
// kernel: tpu_custom_call.1
= control target key start
LH: loop header
LB: loop body
LE: loop exit
PB: predicated region body
PF: predicated region fallthrough
CT: control target
= control target key end

     0   :  { %6 = vsyncpa [#allocation3], 0  ;;  %s132_s0 = inlined_call_operand.hbm [shape: s32[1,128], index: 0, kind: input, shape index: {}, may-alias: {0,1}]   ;;  %s133_s1 = inlined_call_operand.hbm [shape: s32[1,128], index: 1, kind: output, shape index: {}, may-alias: {0,1}]  }
   0x1   :  { %7 = vsyncpa [#allocation4], 0  ;;  %s96_s6 = smov [#allocation2]   ;;  %s48_s10 = scalar_lea.hbm %s132_s0, 16 }
   0x2   :  { %s14_s7 = sshll.u32 %s96_s6, 4  ;;  %p49_p0 = scmp.ne.s32.totalorder %s132_s0, %s48_s10  ;;  %s15_s7 = int_to_ptr.vmem [resolvable:$true] %s14_s7 }
   0x3   :  { %p52_p1 = scmp.lt.u32.totalorder %s48_s10, %s132_s0 }
   0x5   :  { %p54_p2 = pnand %p52_p1, %p49_p0 }
   0x7   :  { %57 = shalt.err (!%p54_p2)
}
   0x8   :  { %s58_s15 = scalar_lea.vmem %s15_s7, 16  ;;  %s62_s16 = scalar_lea.vmem %s15_s7, 32 }
   0x9   :  { %p59_p3 = scmp.ne.s32.totalorder %s15_s7, %s58_s15  ;;  %p63_p4 = scmp.lt.s32.totalorder %s15_s7, %s15_s7 }
   0xa   :  { %p64_p5 = scmp.lt.s32.totalorder %s62_s16, %s58_s15 }
   0xc   :  { %p65_p6 = por %p64_p5, %p63_p4 }
   0xe   :  { %p66_p7 = pnand %p65_p6, %p59_p3 }
  0x10   :  { %69 = shalt.err (!%p66_p7)
}
  0x11   :  { %17 = dma.hbm_to_vmem [thread:$0]  %s132_s0, 16, %s15_s7, [#allocation3]  }
  0x12   :  { %92 = dma.done.wait [#allocation3], 16  }
  0x13   :  { %93 = vsyncadd [#allocation3], 4294967280  ;;  %v21_v0 = vlaneseq  ;;  %s97_s19 = smov [#allocation5]   ;;  %v23_v2 = vld [vmem:[#allocation2] sm:$0x1] }
  0x14   :  { %s37_s20 = sshll.u32 %s97_s19, 4  ;;  %s38_s20 = int_to_ptr.vmem [resolvable:$true] %s37_s20 }
  0x15   :  { %v22_v1 = vand.u32 127, %v21_v0  ;;  %s70_s21 = scalar_lea.vmem %s38_s20, 16  ;;  %s74_s22 = scalar_lea.vmem %s38_s20, 32 }
  0x16   :  { %p71_p8 = scmp.ne.s32.totalorder %s38_s20, %s70_s21  ;;  %p75_p9 = scmp.lt.s32.totalorder %s38_s20, %s38_s20 }
  0x17   :  { %vm24_vm0 = vcmp.eq.s32.totalorder %v22_v1, 0  ;;  %vm26_vm1 = vcmp.eq.s32.totalorder %v22_v1, 25  ;;  %vm28_vm2 = vcmp.gt.s32.totalorder %v22_v1, 25  ;;  %p76_p10 = scmp.lt.s32.totalorder %s74_s22, %s70_s21 }
  0x18   :  { %v25_v3 = vsel %vm24_vm0, 1, %v23_v2 }
  0x19   :  { %v27_v4 = vsel %vm26_vm1, 2, %v25_v3  ;;  %p77_p11 = por %p76_p10, %p75_p9 }
  0x1a   :  { %v29_v5 = vsel %vm28_vm2, 29871, %v27_v4 }
  0x1b   :  { %30 = vst [vmem:[#allocation5] sm:$0x1] %v29_v5  ;;  %p78_p12 = pnand %p77_p11, %p71_p8 }
  0x1d   :  { %81 = shalt.err (!%p78_p12)
}
  0x1e   :  { %s82_s24 = scalar_lea.hbm %s133_s1, 16 }
  0x1f   :  { %p83_p13 = scmp.ne.s32.totalorder %s133_s1, %s82_s24  ;;  %p86_p0 = scmp.lt.u32.totalorder %s82_s24, %s133_s1 }
  0x21   :  { %p88_p1 = pnand %p86_p0, %p83_p13 }
  0x23   :  { %91 = shalt.err (!%p88_p1)
}
  0x24   :  { %40 = dma.vmem_to_hbm [thread:$0]  %s38_s20, 16, %s133_s1, [#allocation4]  }
  0x25   :  { %94 = dma.done.wait [#allocation4], 16  }
  0x26   :  { %95 = vsyncadd [#allocation4], 4294967280 }
  0x27   :  { %44 = vsyncpa [#allocation3], 1 }
  0x28   :  { %45 = vsyncpa [#allocation4], 1 }

</bundles_post_ra>
